<compile_context>
chip_gen: v7x
topology: tpu7x:2x2x1
jax: 0.10.0
libtpu: 0.0.40
codegen_flags: <defaults>
</compile_context>

<pallas_src>
import math
import functools

import jax
import jax.numpy as jnp
from jax import lax
from jax.experimental import pallas as pl
from jax.experimental.pallas import tpu as pltpu

CFG = dict(
    emb_dim=32,
    context_length=8,
    n_heads=4,
    qkv_bias=True,
    drop_rate_att=0.0,        # eval mode -> identity
    drop_rate_shortcut=0.0,   # eval mode -> identity
)
EPS = 1e-5
NEG_INF = -1e30


# ---------------------------------------------------------------------------
# math helpers (used both inside the kernel and in the pure-JAX reference)
# ---------------------------------------------------------------------------
def _layernorm(x, scale, shift):
    mean = jnp.mean(x, axis=-1, keepdims=True)
    var = jnp.mean((x - mean) ** 2, axis=-1, keepdims=True)  # unbiased=False
    return scale * ((x - mean) * lax.rsqrt(var + EPS)) + shift


def _gelu(x):
    # tanh-approximation GELU (matches the book's GELU module); cube kept on the VALU
    c = math.sqrt(2.0 / math.pi)
    return 0.5 * x * (1.0 + jnp.tanh(c * (x + 0.044715 * (x * x * x))))


# ---------------------------------------------------------------------------
# Pallas kernel: one transformer block, one batch element per grid step
# ---------------------------------------------------------------------------
def transformer_block_kernel(x_ref,        # (T, D)      tokens of this batch element
                             bias_ref,     # (T, T)      additive causal mask (0/-1e30)
                             slab_ref,     # (8, 4D)     packed small params
                             wattn_ref,    # (D, 4D)     [wqkv | wo]
                             w1_ref,       # (D, 4D)
                             w2_ref,       # (4D, D)
                             o_ref,        # (T, D)
                             *, num_heads):
    T, D = x_ref.shape
    H = num_heads
    hd = D // H
    inv_sqrt_hd = 1.0 / math.sqrt(hd)

    x = x_ref[...]                                         # (T, D)

    # unpack the parameter slab (static slices, one aligned (8,128) tile)
    slab = slab_ref[...]
    ln1_s = slab[0:1, :D]
    ln1_b = slab[1:2, :D]
    ln2_s = slab[2:3, :D]
    ln2_b = slab[3:4, :D]
    bo    = slab[4:5, :D]
    b2    = slab[5:6, :D]
    b1    = slab[6:7, :]                                   # (1, 4D)
    bqkv  = slab[7:8, :3 * D]                              # (1, 3D)

    w_attn = wattn_ref[...]                                # (D, 4D)
    wqkv = w_attn[:, :3 * D]                               # (D, 3D)
    wo   = w_attn[:, 3 * D:]                               # (D, D)

    # ---------------- attention sub-block ----------------
    h = _layernorm(x, ln1_s, ln1_b)                        # (T, D)

    # Fused, lane-dense QKV projection: one MXU matmul.
    qkv = jnp.dot(h, wqkv, preferred_element_type=jnp.float32) + bqkv   # (T, 3D)
    q = qkv[:, :D] * inv_sqrt_hd        # 1/sqrt(hd) folded into q once
    k = qkv[:, D:2 * D]
    v = qkv[:, 2 * D:]

    # Head split (tiny vreg relayouts; all tensors are <= (8,32) f32):
    #  - q, v -> (H, T, hd) via leading-axis swap
    #  - k    -> (H, hd, T): one 2-D transpose then a layout-preserving major split,
    #            i.e. k arrives already transposed for the score matmul.
    qh  = jnp.swapaxes(q.reshape(T, H, hd), 0, 1)          # (H, T, hd)
    vh  = jnp.swapaxes(v.reshape(T, H, hd), 0, 1)          # (H, T, hd)
    khT = k.T.reshape(H, hd, T)                            # (H, hd, T)

    # Plain batched (n,d)@(d,m) — no implicit transpose inside the dot.
    s = jnp.einsum('hnd,hdm->hnm', qh, khT,
                   preferred_element_type=jnp.float32)     # (H, T, T)
    s = s + bias_ref[...]                                  # precomputed causal bias
    s = s - jnp.max(s, axis=-1, keepdims=True)
    p = jnp.exp(s)
    # approx reciprocal (EUP) ~1e-4 rel. err vs exact softmax; use approx=False for parity
    p = p * pl.reciprocal(jnp.sum(p, axis=-1, keepdims=True), approx=True)
    # attention dropout: identity (rate 0.0 / eval mode)

    ctx = jnp.einsum('hnm,hmd->hnd', p, vh,
                     preferred_element_type=jnp.float32)   # (H, T, hd)
    ctx2 = jnp.swapaxes(ctx, 0, 1).reshape(T, D)           # lane-dense concat(heads)

    # Single lane-dense output projection.
    att = jnp.dot(ctx2, wo, preferred_element_type=jnp.float32) + bo
    # drop_shortcut: identity (eval mode)
    x1 = att + x

    # ---------------- feed-forward sub-block ----------------
    h2 = _layernorm(x1, ln2_s, ln2_b)
    h2 = jnp.dot(h2, w1_ref[...], preferred_element_type=jnp.float32) + b1
    h2 = _gelu(h2)
    h2 = jnp.dot(h2, w2_ref[...], preferred_element_type=jnp.float32) + b2
    # drop_shortcut: identity (eval mode)
    o_ref[...] = (h2 + x1).astype(o_ref.dtype)


def transformer_block(x, params, *, num_heads):
    B, T, D = x.shape
    D4 = 4 * D

    # -------- wrapper-side layout plumbing (one-time, free) --------
    # attention weights packed into one (D, 4D) slab: [wqkv | wo]
    w_attn = jnp.concatenate([params["wqkv"], params["wo"]], axis=1)      # (D, 4D)

    # small params packed into a single (8, 4D) slab (one aligned (8,128) tile)
    slab = jnp.zeros((8, D4), jnp.float32)
    slab = slab.at[0, :D].set(params["ln1_s"][0])
    slab = slab.at[1, :D].set(params["ln1_b"][0])
    slab = slab.at[2, :D].set(params["ln2_s"][0])
    slab = slab.at[3, :D].set(params["ln2_b"][0])
    slab = slab.at[4, :D].set(params["bo"][0])
    slab = slab.at[5, :D].set(params["b2"][0])
    slab = slab.at[6, :].set(params["b1"][0])
    slab = slab.at[7, :3 * D].set(params["bqkv"][0])

    # precomputed causal additive bias: 0 where j<=i, -1e30 otherwise
    r = jnp.arange(T)
    bias = jnp.where(r[None, :] <= r[:, None], 0.0, NEG_INF).astype(jnp.float32)

    out = pl.pallas_call(
        functools.partial(transformer_block_kernel, num_heads=num_heads),
        out_shape=jax.ShapeDtypeStruct((B, T, D), x.dtype),
        grid=(B,),
        in_specs=[
            pl.BlockSpec((None, T, D), lambda b: (b, 0, 0)),   # x: per-batch tile
            pl.BlockSpec((T, T), lambda b: (0, 0)),            # causal bias (resident)
            pl.BlockSpec((8, D4), lambda b: (0, 0)),           # packed small params
            pl.BlockSpec((D, D4), lambda b: (0, 0)),           # [wqkv | wo]
            pl.BlockSpec((D, D4), lambda b: (0, 0)),           # w1
            pl.BlockSpec((D4, D), lambda b: (0, 0)),           # w2
        ],
        out_specs=pl.BlockSpec((None, T, D), lambda b: (b, 0, 0)),
        compiler_params=pltpu.CompilerParams(
            dimension_semantics=("parallel",)),                # batch -> both TCs on v7x
    )(x, bias, slab, w_attn, params["w1"], params["w2"])
    return out


# ---------------------------------------------------------------------------
# pure-JAX reference (same math, no Pallas) for a correctness check
# ---------------------------------------------------------------------------
def transformer_block_ref(x, params, *, num_heads):
    B, T, D = x.shape
    hd = D // num_heads

    shortcut = x
    h = _layernorm(x, params["ln1_s"][0], params["ln1_b"][0])
    qkv = h @ params["wqkv"] + params["bqkv"][0]
    q, k, v = qkv[..., :D], qkv[..., D:2 * D], qkv[..., 2 * D:]

    def split(t):  # [B,T,D] -> [B,H,T,hd]
        return t.reshape(B, T, num_heads, hd).transpose(0, 2, 1, 3)

    q, k, v = split(q), split(k), split(v)
    s = jnp.einsum("bhtd,bhsd->bhts", q, k) / math.sqrt(hd)
    causal = jnp.tril(jnp.ones((T, T), dtype=bool))
    s = jnp.where(causal, s, NEG_INF)
    p = jax.nn.softmax(s, axis=-1)
    ctx = jnp.einsum("bhts,bhsd->bhtd", p, v).transpose(0, 2, 1, 3).reshape(B, T, D)
    att = ctx @ params["wo"] + params["bo"][0]
    x1 = att + shortcut

    shortcut = x1
    h = _layernorm(x1, params["ln2_s"][0], params["ln2_b"][0])
    h = h @ params["w1"] + params["b1"][0]
    h = _gelu(h)
    h = h @ params["w2"] + params["b2"][0]
    return h + shortcut


# ---------------------------------------------------------------------------
def init_params(key, emb_dim):
    D, H4 = emb_dim, 4 * emb_dim
    ks = jax.random.split(key, 6)
    std = 0.02
    return dict(
        ln1_s=jnp.ones((1, D), jnp.float32),
        ln1_b=jnp.zeros((1, D), jnp.float32),
        wqkv=std * jax.random.normal(ks[0], (D, 3 * D), jnp.float32),
        bqkv=std * jax.random.normal(ks[1], (1, 3 * D), jnp.float32),  # qkv_bias=True
        wo=std * jax.random.normal(ks[2], (D, D), jnp.float32),
        bo=jnp.zeros((1, D), jnp.float32),
        ln2_s=jnp.ones((1, D), jnp.float32),
        ln2_b=jnp.zeros((1, D), jnp.float32),
        w1=std * jax.random.normal(ks[3], (D, H4), jnp.float32),
        b1=std * jax.random.normal(ks[4], (1, H4), jnp.float32),
        w2=std * jax.random.normal(ks[5], (H4, D), jnp.float32),
        b2=jnp.zeros((1, D), jnp.float32),
    )


if __name__ == "__main__":
    key = jax.random.PRNGKey(0)
    k_x, k_p = jax.random.split(key)

    B, T, D = 2, CFG["context_length"], CFG["emb_dim"]
    x = jax.random.normal(k_x, (B, T, D), jnp.float32)
    params = init_params(k_p, D)

    out = transformer_block(x, params, num_heads=CFG["n_heads"])
    out = jax.block_until_ready(out)

    ref = transformer_block_ref(x, params, num_heads=CFG["n_heads"])
    assert out.shape == (B, T, D)
    err = jnp.max(jnp.abs(out - ref))
    # 2e-3 tolerance: covers the deliberate approx-reciprocal softmax denominator
    assert jnp.allclose(out, ref, atol=2e-3, rtol=2e-3), f"max abs err = {err}"

    print("KERNEL_OK")
</pallas_src>

<mosaic_0001>
module attributes {stable_mosaic.version = 11 : i64} {
  func.func @transformer_block_kernel(%arg0: i32, %arg1: memref<1x8x32xf32, #tpu.memory_space<vmem>>, %arg2: memref<8x8xf32, #tpu.memory_space<vmem>>, %arg3: memref<8x128xf32, #tpu.memory_space<vmem>>, %arg4: memref<32x128xf32, #tpu.memory_space<vmem>>, %arg5: memref<32x128xf32, #tpu.memory_space<vmem>>, %arg6: memref<128x32xf32, #tpu.memory_space<vmem>>, %arg7: memref<1x8x32xf32, #tpu.memory_space<vmem>>) attributes {dimension_semantics = [#tpu.dimension_semantics<parallel>], iteration_bounds = array<i64: 2>, scalar_prefetch = 0 : i64, scratch_operands = 0 : i64, tpu.core_type = #tpu.core_type<tc>, window_params = [{transform_indices = @transform_0, window_bounds = array<i64: 1, 8, 32>}, {pipeline_mode = #tpu.pipeline_mode<synchronous>, transform_indices = @transform_1, window_bounds = array<i64: 8, 8>}, {pipeline_mode = #tpu.pipeline_mode<synchronous>, transform_indices = @transform_2, window_bounds = array<i64: 8, 128>}, {pipeline_mode = #tpu.pipeline_mode<synchronous>, transform_indices = @transform_3, window_bounds = array<i64: 32, 128>}, {pipeline_mode = #tpu.pipeline_mode<synchronous>, transform_indices = @transform_4, window_bounds = array<i64: 32, 128>}, {pipeline_mode = #tpu.pipeline_mode<synchronous>, transform_indices = @transform_5, window_bounds = array<i64: 128, 32>}, {transform_indices = @transform_6, window_bounds = array<i64: 1, 8, 32>}]} {
    %c0 = arith.constant 0 : index
    %c0_0 = arith.constant 0 : index
    %c0_1 = arith.constant 0 : index
    %0 = vector.load %arg1[%c0, %c0_0, %c0_1] : memref<1x8x32xf32, #tpu.memory_space<vmem>>, vector<1x8x32xf32>
    %1 = vector.shape_cast %0 : vector<1x8x32xf32> to vector<8x32xf32>
    %c0_2 = arith.constant 0 : index
    %c0_3 = arith.constant 0 : index
    %2 = vector.load %arg3[%c0_2, %c0_3] : memref<8x128xf32, #tpu.memory_space<vmem>>, vector<8x128xf32>
    %3 = vector.extract_strided_slice %2 {offsets = [0, 0], sizes = [1, 32], strides = [1, 1]} : vector<8x128xf32> to vector<1x32xf32>
    %4 = vector.extract_strided_slice %2 {offsets = [1, 0], sizes = [1, 32], strides = [1, 1]} : vector<8x128xf32> to vector<1x32xf32>
    %5 = vector.extract_strided_slice %2 {offsets = [2, 0], sizes = [1, 32], strides = [1, 1]} : vector<8x128xf32> to vector<1x32xf32>
    %6 = vector.extract_strided_slice %2 {offsets = [3, 0], sizes = [1, 32], strides = [1, 1]} : vector<8x128xf32> to vector<1x32xf32>
    %7 = vector.extract_strided_slice %2 {offsets = [4, 0], sizes = [1, 32], strides = [1, 1]} : vector<8x128xf32> to vector<1x32xf32>
    %8 = vector.extract_strided_slice %2 {offsets = [5, 0], sizes = [1, 32], strides = [1, 1]} : vector<8x128xf32> to vector<1x32xf32>
    %9 = vector.extract_strided_slice %2 {offsets = [6, 0], sizes = [1, 128], strides = [1, 1]} : vector<8x128xf32> to vector<1x128xf32>
    %10 = vector.extract_strided_slice %2 {offsets = [7, 0], sizes = [1, 96], strides = [1, 1]} : vector<8x128xf32> to vector<1x96xf32>
    %c0_4 = arith.constant 0 : index
    %c0_5 = arith.constant 0 : index
    %11 = vector.load %arg4[%c0_4, %c0_5] : memref<32x128xf32, #tpu.memory_space<vmem>>, vector<32x128xf32>
    %12 = vector.extract_strided_slice %11 {offsets = [0, 0], sizes = [32, 96], strides = [1, 1]} : vector<32x128xf32> to vector<32x96xf32>
    %13 = vector.extract_strided_slice %11 {offsets = [0, 96], sizes = [32, 32], strides = [1, 1]} : vector<32x128xf32> to vector<32x32xf32>
    %cst = arith.constant dense<0.000000e+00> : vector<8xf32>
    %14 = vector.multi_reduction <add>, %1, %cst [1] : vector<8x32xf32> to vector<8xf32>
    %15 = vector.shape_cast %14 : vector<8xf32> to vector<8x1xf32>
    %cst_6 = arith.constant 3.200000e+01 : f32
    %16 = vector.broadcast %cst_6 : f32 to vector<8x1xf32>
    %17 = arith.divf %15, %16 : vector<8x1xf32>
    %18 = vector.broadcast %17 : vector<8x1xf32> to vector<8x32xf32>
    %19 = arith.subf %1, %18 : vector<8x32xf32>
    %20 = arith.mulf %19, %19 : vector<8x32xf32>
    %cst_7 = arith.constant dense<0.000000e+00> : vector<8xf32>
    %21 = vector.multi_reduction <add>, %20, %cst_7 [1] : vector<8x32xf32> to vector<8xf32>
    %22 = vector.shape_cast %21 : vector<8xf32> to vector<8x1xf32>
    %cst_8 = arith.constant 3.200000e+01 : f32
    %23 = vector.broadcast %cst_8 : f32 to vector<8x1xf32>
    %24 = arith.divf %22, %23 : vector<8x1xf32>
    %25 = vector.broadcast %17 : vector<8x1xf32> to vector<8x32xf32>
    %26 = arith.subf %1, %25 : vector<8x32xf32>
    %cst_9 = arith.constant 9.99999974E-6 : f32
    %27 = vector.broadcast %cst_9 : f32 to vector<8x1xf32>
    %28 = arith.addf %24, %27 : vector<8x1xf32>
    %29 = math.rsqrt %28 : vector<8x1xf32>
    %30 = vector.broadcast %29 : vector<8x1xf32> to vector<8x32xf32>
    %31 = arith.mulf %26, %30 : vector<8x32xf32>
    %32 = vector.broadcast %3 : vector<1x32xf32> to vector<8x32xf32>
    %33 = arith.mulf %32, %31 : vector<8x32xf32>
    %34 = vector.broadcast %4 : vector<1x32xf32> to vector<8x32xf32>
    %35 = arith.addf %33, %34 : vector<8x32xf32>
    %cst_10 = arith.constant dense<0.000000e+00> : vector<8x96xf32>
    %36 = tpu.matmul %35, %12, %cst_10 {dimension_numbers = #tpu.dot_dimension_numbers<[1], [0], [0], [1], [0, 0, 1, 1], [], []>} : vector<8x32xf32>, vector<32x96xf32>, vector<8x96xf32> -> vector<8x96xf32>
    %37 = vector.broadcast %10 : vector<1x96xf32> to vector<8x96xf32>
    %38 = arith.addf %36, %37 : vector<8x96xf32>
    %39 = vector.extract_strided_slice %38 {offsets = [0, 0], sizes = [8, 32], strides = [1, 1]} : vector<8x96xf32> to vector<8x32xf32>
    %cst_11 = arith.constant 0.353553385 : f32
    %40 = vector.broadcast %cst_11 : f32 to vector<8x32xf32>
    %41 = arith.mulf %39, %40 : vector<8x32xf32>
    %42 = vector.extract_strided_slice %38 {offsets = [0, 32], sizes = [8, 32], strides = [1, 1]} : vector<8x96xf32> to vector<8x32xf32>
    %43 = vector.extract_strided_slice %38 {offsets = [0, 64], sizes = [8, 32], strides = [1, 1]} : vector<8x96xf32> to vector<8x32xf32>
    %44 = vector.shape_cast %41 : vector<8x32xf32> to vector<8x4x8xf32>
    %45 = tpu.transpose %44, [1, 0, 2] : vector<8x4x8xf32> -> vector<4x8x8xf32>
    %46 = vector.shape_cast %43 : vector<8x32xf32> to vector<8x4x8xf32>
    %47 = tpu.transpose %46, [1, 0, 2] : vector<8x4x8xf32> -> vector<4x8x8xf32>
    %48 = tpu.transpose %42, [1, 0] : vector<8x32xf32> -> vector<32x8xf32>
    %49 = vector.shape_cast %48 : vector<32x8xf32> to vector<4x8x8xf32>
    "tpu.trace_start"() <{level = 10 : i32, message = "hnd,hdm->hnm"}> : () -> ()
    %cst_12 = arith.constant dense<0.000000e+00> : vector<4x8x8xf32>
    %50 = tpu.matmul %45, %49, %cst_12 {dimension_numbers = #tpu.dot_dimension_numbers<[2], [1], [1], [2], [0, 0, 0, 1, 1, 2], [0], [0]>} : vector<4x8x8xf32>, vector<4x8x8xf32>, vector<4x8x8xf32> -> vector<4x8x8xf32>
    "tpu.trace_stop"() : () -> ()
    %c0_13 = arith.constant 0 : index
    %c0_14 = arith.constant 0 : index
    %51 = vector.load %arg2[%c0_13, %c0_14] : memref<8x8xf32, #tpu.memory_space<vmem>>, vector<8x8xf32>
    %52 = vector.shape_cast %51 : vector<8x8xf32> to vector<1x8x8xf32>
    %53 = vector.broadcast %52 : vector<1x8x8xf32> to vector<4x8x8xf32>
    %54 = arith.addf %50, %53 : vector<4x8x8xf32>
    %cst_15 = arith.constant dense<0xFF800000> : vector<4x8xf32>
    %55 = vector.multi_reduction <maximumf>, %54, %cst_15 [2] : vector<4x8x8xf32> to vector<4x8xf32>
    %56 = vector.shape_cast %55 : vector<4x8xf32> to vector<4x8x1xf32>
    %57 = vector.broadcast %56 : vector<4x8x1xf32> to vector<4x8x8xf32>
    %58 = arith.subf %54, %57 : vector<4x8x8xf32>
    %59 = math.exp %58 : vector<4x8x8xf32>
    %cst_16 = arith.constant dense<0.000000e+00> : vector<4x8xf32>
    %60 = vector.multi_reduction <add>, %59, %cst_16 [2] : vector<4x8x8xf32> to vector<4x8xf32>
    %61 = vector.shape_cast %60 : vector<4x8xf32> to vector<4x8x1xf32>
    %62 = tpu.reciprocal %61 {approx = true} : vector<4x8x1xf32> -> vector<4x8x1xf32>
    %63 = vector.broadcast %62 : vector<4x8x1xf32> to vector<4x8x8xf32>
    %64 = arith.mulf %59, %63 : vector<4x8x8xf32>
    "tpu.trace_start"() <{level = 10 : i32, message = "hnm,hmd->hnd"}> : () -> ()
    %cst_17 = arith.constant dense<0.000000e+00> : vector<4x8x8xf32>
    %65 = tpu.matmul %64, %47, %cst_17 {dimension_numbers = #tpu.dot_dimension_numbers<[2], [1], [1], [2], [0, 0, 0, 1, 1, 2], [0], [0]>} : vector<4x8x8xf32>, vector<4x8x8xf32>, vector<4x8x8xf32> -> vector<4x8x8xf32>
    "tpu.trace_stop"() : () -> ()
    %66 = tpu.transpose %65, [1, 0, 2] : vector<4x8x8xf32> -> vector<8x4x8xf32>
    %67 = vector.shape_cast %66 : vector<8x4x8xf32> to vector<8x32xf32>
    %cst_18 = arith.constant dense<0.000000e+00> : vector<8x32xf32>
    %68 = tpu.matmul %67, %13, %cst_18 {dimension_numbers = #tpu.dot_dimension_numbers<[1], [0], [0], [1], [0, 0, 1, 1], [], []>} : vector<8x32xf32>, vector<32x32xf32>, vector<8x32xf32> -> vector<8x32xf32>
    %69 = vector.broadcast %7 : vector<1x32xf32> to vector<8x32xf32>
    %70 = arith.addf %68, %69 : vector<8x32xf32>
    %71 = arith.addf %70, %1 : vector<8x32xf32>
    %cst_19 = arith.constant dense<0.000000e+00> : vector<8xf32>
    %72 = vector.multi_reduction <add>, %71, %cst_19 [1] : vector<8x32xf32> to vector<8xf32>
    %73 = vector.shape_cast %72 : vector<8xf32> to vector<8x1xf32>
    %cst_20 = arith.constant 3.200000e+01 : f32
    %74 = vector.broadcast %cst_20 : f32 to vector<8x1xf32>
    %75 = arith.divf %73, %74 : vector<8x1xf32>
    %76 = vector.broadcast %75 : vector<8x1xf32> to vector<8x32xf32>
    %77 = arith.subf %71, %76 : vector<8x32xf32>
    %78 = arith.mulf %77, %77 : vector<8x32xf32>
    %cst_21 = arith.constant dense<0.000000e+00> : vector<8xf32>
    %79 = vector.multi_reduction <add>, %78, %cst_21 [1] : vector<8x32xf32> to vector<8xf32>
    %80 = vector.shape_cast %79 : vector<8xf32> to vector<8x1xf32>
    %cst_22 = arith.constant 3.200000e+01 : f32
    %81 = vector.broadcast %cst_22 : f32 to vector<8x1xf32>
    %82 = arith.divf %80, %81 : vector<8x1xf32>
    %83 = vector.broadcast %75 : vector<8x1xf32> to vector<8x32xf32>
    %84 = arith.subf %71, %83 : vector<8x32xf32>
    %cst_23 = arith.constant 9.99999974E-6 : f32
    %85 = vector.broadcast %cst_23 : f32 to vector<8x1xf32>
    %86 = arith.addf %82, %85 : vector<8x1xf32>
    %87 = math.rsqrt %86 : vector<8x1xf32>
    %88 = vector.broadcast %87 : vector<8x1xf32> to vector<8x32xf32>
    %89 = arith.mulf %84, %88 : vector<8x32xf32>
    %90 = vector.broadcast %5 : vector<1x32xf32> to vector<8x32xf32>
    %91 = arith.mulf %90, %89 : vector<8x32xf32>
    %92 = vector.broadcast %6 : vector<1x32xf32> to vector<8x32xf32>
    %93 = arith.addf %91, %92 : vector<8x32xf32>
    %c0_24 = arith.constant 0 : index
    %c0_25 = arith.constant 0 : index
    %94 = vector.load %arg5[%c0_24, %c0_25] : memref<32x128xf32, #tpu.memory_space<vmem>>, vector<32x128xf32>
    %cst_26 = arith.constant dense<0.000000e+00> : vector<8x128xf32>
    %95 = tpu.matmul %93, %94, %cst_26 {dimension_numbers = #tpu.dot_dimension_numbers<[1], [0], [0], [1], [0, 0, 1, 1], [], []>} : vector<8x32xf32>, vector<32x128xf32>, vector<8x128xf32> -> vector<8x128xf32>
    %96 = vector.broadcast %9 : vector<1x128xf32> to vector<8x128xf32>
    %97 = arith.addf %95, %96 : vector<8x128xf32>
    %cst_27 = arith.constant 5.000000e-01 : f32
    %98 = vector.broadcast %cst_27 : f32 to vector<8x128xf32>
    %99 = arith.mulf %98, %97 : vector<8x128xf32>
    %100 = arith.mulf %97, %97 : vector<8x128xf32>
    %101 = arith.mulf %100, %97 : vector<8x128xf32>
    %cst_28 = arith.constant 4.471500e-02 : f32
    %102 = vector.broadcast %cst_28 : f32 to vector<8x128xf32>
    %103 = arith.mulf %102, %101 : vector<8x128xf32>
    %104 = arith.addf %97, %103 : vector<8x128xf32>
    %cst_29 = arith.constant 0.797884583 : f32
    %105 = vector.broadcast %cst_29 : f32 to vector<8x128xf32>
    %106 = arith.mulf %105, %104 : vector<8x128xf32>
    %107 = math.tanh %106 : vector<8x128xf32>
    %cst_30 = arith.constant 1.000000e+00 : f32
    %108 = vector.broadcast %cst_30 : f32 to vector<8x128xf32>
    %109 = arith.addf %108, %107 : vector<8x128xf32>
    %110 = arith.mulf %99, %109 : vector<8x128xf32>
    %c0_31 = arith.constant 0 : index
    %c0_32 = arith.constant 0 : index
    %111 = vector.load %arg6[%c0_31, %c0_32] : memref<128x32xf32, #tpu.memory_space<vmem>>, vector<128x32xf32>
    %cst_33 = arith.constant dense<0.000000e+00> : vector<8x32xf32>
    %112 = tpu.matmul %110, %111, %cst_33 {dimension_numbers = #tpu.dot_dimension_numbers<[1], [0], [0], [1], [0, 0, 1, 1], [], []>} : vector<8x128xf32>, vector<128x32xf32>, vector<8x32xf32> -> vector<8x32xf32>
    %113 = vector.broadcast %8 : vector<1x32xf32> to vector<8x32xf32>
    %114 = arith.addf %112, %113 : vector<8x32xf32>
    %115 = arith.addf %114, %71 : vector<8x32xf32>
    %c0_34 = arith.constant 0 : index
    %c0_35 = arith.constant 0 : index
    %c0_36 = arith.constant 0 : index
    %116 = vector.load %arg7[%c0_34, %c0_35, %c0_36] : memref<1x8x32xf32, #tpu.memory_space<vmem>>, vector<1x8x32xf32>
    %117 = vector.shape_cast %116 : vector<1x8x32xf32> to vector<8x32xf32>
    %118 = vector.shape_cast %115 : vector<8x32xf32> to vector<1x8x32xf32>
    tpu.vector_store %arg7[%c0_34, %c0_35, %c0_36], %118 {strides = array<i32>} : memref<1x8x32xf32, #tpu.memory_space<vmem>>, vector<1x8x32xf32>,
    return
  }
  func.func @transform_0(%arg0: i32) -> (i32, i32, i32) {
    %c0_i32 = arith.constant 0 : i32
    %c0_i32_0 = arith.constant 0 : i32
    %c0_i32_1 = arith.constant 0 : i32
    return %arg0, %c0_i32, %c0_i32_0 : i32, i32, i32
  }
  func.func @transform_1(%arg0: i32) -> (i32, i32) {
    %c0_i32 = arith.constant 0 : i32
    %c0_i32_0 = arith.constant 0 : i32
    %c0_i32_1 = arith.constant 0 : i32
    return %c0_i32, %c0_i32_0 : i32, i32
  }
  func.func @transform_2(%arg0: i32) -> (i32, i32) {
    %c0_i32 = arith.constant 0 : i32
    %c0_i32_0 = arith.constant 0 : i32
    %c0_i32_1 = arith.constant 0 : i32
    return %c0_i32, %c0_i32_0 : i32, i32
  }
  func.func @transform_3(%arg0: i32) -> (i32, i32) {
    %c0_i32 = arith.constant 0 : i32
    %c0_i32_0 = arith.constant 0 : i32
    %c0_i32_1 = arith.constant 0 : i32
    return %c0_i32, %c0_i32_0 : i32, i32
  }
  func.func @transform_4(%arg0: i32) -> (i32, i32) {
    %c0_i32 = arith.constant 0 : i32
    %c0_i32_0 = arith.constant 0 : i32
    %c0_i32_1 = arith.constant 0 : i32
    return %c0_i32, %c0_i32_0 : i32, i32
  }
  func.func @transform_5(%arg0: i32) -> (i32, i32) {
    %c0_i32 = arith.constant 0 : i32
    %c0_i32_0 = arith.constant 0 : i32
    %c0_i32_1 = arith.constant 0 : i32
    return %c0_i32, %c0_i32_0 : i32, i32
  }
  func.func @transform_6(%arg0: i32) -> (i32, i32, i32) {
    %c0_i32 = arith.constant 0 : i32
    %c0_i32_0 = arith.constant 0 : i32
    %c0_i32_1 = arith.constant 0 : i32
    return %arg0, %c0_i32, %c0_i32_0 : i32, i32, i32
  }
}

</mosaic_0001>

<bundles_post_ra>
// kernel: tpu_custom_call.1
= control target key start
LH: loop header
LB: loop body
LE: loop exit
PB: predicated region body
PF: predicated region fallthrough
CT: control target
= control target key end

     0   :  { %11 = vsyncpa [#allocation3], 0  ;;  %s2651_s0 = inlined_call_operand.vmem [shape: f32[2,8,32], index: 0, kind: input, shape index: {}]   ;;  %s2652_s1 = inlined_call_operand.vmem [shape: f32[8,8], index: 1, kind: input, shape index: {}]   ;;  %s2653_s2 = inlined_call_operand.vmem [shape: f32[8,128], index: 2, kind: input, shape index: {}]   ;;  %s2654_s3 = inlined_call_operand.vmem [shape: f32[32,128], index: 3, kind: input, shape index: {}]   ;;  %s2655_s4 = inlined_call_operand.vmem [shape: f32[32,128], index: 4, kind: input, shape index: {}]   ;;  %s2656_s5 = inlined_call_operand.vmem [shape: f32[128,32], index: 5, kind: input, shape index: {}]   ;;  %s2657_s6 = inlined_call_operand.hbm [shape: f32[2,8,32], index: 6, kind: output, shape index: {}]  }
   0x1   :  { %13 = vsyncpa [#allocation3 + $0x1], 0  ;;  %s2271_s21 = smov 0   ;;  %s2273_s22 = smov 0  }
   0x2   :  { %s2275_s23 = smov 0   ;;  %s2277_s24 = smov 0  }
   0x3 LB: > { %s2292_s25 = sadd.s32 4294967295, %s2219_s24   ;;  %s1847_s26 = sadd.s32 4294967294, %s2219_s24   ;;  %s2219_s24 = sphi %s2277_s24, %s2663_s24   ;;  %s2215_s23 = sphi %s2275_s23, %s2662_s23   ;;  %s2211_s22 = sphi %s2273_s22, %s2661_s22   ;;  %s2207_s21 = sphi %s2271_s21, %s2660_s21  }
   0x4   : > { %s2296_s27 = sadd.s32 1, %s2219_s24   ;;  %s157_s28 = sadd.s32 1, %s2215_s23 }
   0x5   : > { %s154_s29 = ssub.s32 %s2219_s24, %s2296_s27  ;;  %p167_p0 = scmp.ne.s32.totalorder %s2215_s23, %s2211_s22 }
   0x6   : > { %p155_p1 = scmp.eq.s32.totalorder %s154_s29, 0  ;;  %p168_p2 = scmp.eq.s32.totalorder %s2292_s25, 1 }
   0x7   : > { %p173_p3 = scmp.ne.s32.totalorder %s2211_s22, %s2207_s21  ;;  %p174_p4 = scmp.eq.s32.totalorder %s1847_s26, 1 }
   0x8   : > { %s2307_s30 = scalar_select %p155_p1, %s2215_s23, %s157_s28  }
   0x9   : > { %p2309_p5 = por %p168_p2, %p167_p0  ;;  %p2313_p6 = por %p174_p4, %p173_p3 }
   0xa   : > { %p1850_p7 = scmp.ge.s32.totalorder %s2219_s24, 1  ;;  %p214_p8 = scmp.lt.s32.totalorder %s2219_s24, 3 }
   0xc   : > { %p215_p9 = pnand %p1850_p7, %p214_p8 }
   0xd   : > { %p243_p10 = scmp.lt.s32.totalorder (!%p215_p9), %s2292_s25, 1  ;;  %vm253_vm0 = vcmask (!%p215_p9), 261120   ;;  %v2333_v7 = vld [vmem:[%s2654_s3] sm:$0xff] (!%p215_p9)  ;;  %v2338_v8 = vld [vmem:[%s2654_s3 + $0x8] sm:$0xff] (!%p215_p9)  ;;  %v2343_v9 = vld [vmem:[%s2654_s3 + $0x10] sm:$0xff] (!%p215_p9)  ;;  %v2221_v10 = vmov (!%p215_p9), 0.0|0.0   ;;  %v268_v18 = vlaneseq (!%p215_p9) }
   0xe   : > { %218 = sbr.rel (%p215_p9) target bundleno = 2732 (0xaac), region = 44  ;;  %2030 = vmatprep.subr.bf16.mxu0 (!%p215_p9), %v2221_v10  ;;  %v2125_v11 = vpack.i.bf16 (!%p215_p9), %v2338_v8, %v2333_v7  ;;  %v2031_v12 = vpack.c.bf16 (!%p215_p9), %v2338_v8, %v2333_v7  ;;  %v2353_v13 = vld [vmem:[%s2654_s3 + $0x18] sm:$0xff] (!%p215_p9)  ;;  %vm2222_vm1 = vmmov (!%p215_p9), 0   ;;  %v2223_v14 = vmov (!%p215_p9), 0.0   ;;  %v2370_v22 = vld [vmem:[%s2653_s2] sm:$0xff] (!%p215_p9)  ;;  %s2226_s11 = smov (!%p215_p9), 120  }
   0xf   : > { %1930 = vmatprep.mubr.msk.f32.mxu0 (!%p215_p9), %vm2222_vm1, %v2223_v14  ;;  %1943 = vmatprep.subr.mxu1 (!%p215_p9), %v2223_v14  ;;  %v2034_v15 = vpack.c.bf16 (!%p215_p9), %v2353_v13, %v2343_v9  ;;  %v2364_v20 = vshrl.u32 (!%p215_p9), %v268_v18, 7  ;;  %s2227_s12 = smov (!%p215_p9), 104   ;;  %v2228_v38 = vmov (!%p215_p9), 1983009808   ;;  %v2229_v42 = vmov (!%p215_p9), 1934713408  }
  0x10   : > { %1945 = vmatprep.mubr.msk.f32.mxu1 (!%p215_p9), %vm2222_vm1, %v2223_v14  ;;  %2032 = vmatpush3.bf16.msra.mxu0 (!%p215_p9), %v2031_v12  ;;  %v369_v39 = vunpack.c.l.s4 (!%p215_p9), %v2228_v38  ;;  %v401_v43 = vunpack.c.l.s4 (!%p215_p9), %v2229_v42  ;;  %vm693_vm2 = vcmask (!%p215_p9), 64512   ;;  %s2230_s15 = smov (!%p215_p9), 64   ;;  %s2231_s16 = smov (!%p215_p9), 32   ;;  %vm1471_vm3 = vcmask (!%p215_p9), 130048  }
  0x11   : > { %2033 = vmatprep.subr.bf16.mxu0 (!%p215_p9), %v2221_v10  ;;  %v270_v21 = vsub.s32 (!%p215_p9), 0, %v2364_v20  ;;  %v275_v23 = vsub.s32 (!%p215_p9), 1, %v2364_v20  ;;  %v280_v30 = vsub.s32 (!%p215_p9), 7, %v2364_v20  ;;  %s2232_s17 = smov (!%p215_p9), 16   ;;  %s2233_s18 = smov (!%p215_p9), 8   ;;  %vm1473_vm4 = vcmask (!%p215_p9), 195584  }
  0x12   : > { %v370_v41 = vunpack.c.0.s8 (!%p215_p9), %v369_v39  ;;  %v402_v50 = vunpack.c.0.s8 (!%p215_p9), %v401_v43  ;;  %s2234_s19 = smov (!%p215_p9), 24  }
  0x13   : > { %v271_v24 = vrot.slane (!%p215_p9), %v2370_v22, %v270_v21  ;;  %v276_v27 = vrot.slane (!%p215_p9), %v2370_v22, %v275_v23  ;;  %v281_v31 = vrot.slane (!%p215_p9), %v2370_v22, %v280_v30 }
  0x14   : > { %2035 = vmatpush3.bf16.msra.mxu0 (!%p215_p9), %v2034_v15  ;;  %v2388_v47 = vsub.s32 (!%p215_p9), %v370_v41, %v2364_v20  ;;  %v2395_v55 = vsub.s32 (!%p215_p9), %v402_v50, %v2364_v20 }
  0x15   : > { %s244_s9 = scalar_select %p243_p10, %s2292_s25, 1  ;;  %1933 = vmatprep.subr.mxu0 %v2223_v14 }
  0x17   : > { %s1852_s10 = sshll.u32 %s244_s9, 3  ;;  %s2224_s9 = smov 96  }
  0x18   : > { %s246_s13 = scalar_lea.vmem %s2651_s0, %s1852_s10  ;;  %s2225_s10 = smov 112  }
  0x19   : > { %v2324_v0 = vld [vmem:[%s246_s13] sm:$0xff] }
  0x1a   : > { %v254_v1 = vsel %vm253_vm0, %v2324_v0, 0.0 }
  0x1b   : > { %255 = vadd.xlane.f32.xlu0 %v254_v1 }
  0xa8   : > { %v256_v2 = vpop.xlane.xlu0 %255 }
  0xa9   : > { %v258_v3 = vmul.f32 0.03125, %v256_v2 }
  0xab   : > { %v259_v4 = vsub.f32 %v2324_v0, %v258_v3 }
  0xad   : > { %v260_v5 = vmul.f32 %v259_v4, %v259_v4 }
  0xaf   : > { %v261_v6 = vsel %vm253_vm0, %v260_v5, 0.0 }
  0xb0   : > { %262 = vadd.xlane.f32.xlu0 %v261_v6 }
 0x13d   : > { %v263_v16 = vpop.xlane.xlu0 %262 }
 0x13e   : > { %v264_v17 = vmul.f32 0.03125, %v263_v16 }
 0x140   : > { %v265_v19 = vadd.f32 1e-05, %v264_v17 }
 0x142   : > { %2135 = vrsqrt.f32 %v265_v19 }
 0x14c   : > { %v2136_v25 = vpop.eup %2135 }
 0x14d   : > { %v267_v26 = vmul.f32 %v2136_v25, %v259_v4 }
 0x14f   : > { %v272_v28 = vmul.f32 %v271_v24, %v267_v26 }
 0x151   : > { %v277_v29 = vadd.f32 %v276_v27, %v272_v28 }
 0x153   : > { %1931 = vmatmul.mubr.msk.f32.vlgmr.msra.gmra.mrb[0].mxu0 %vm253_vm0, %v277_v29 }
 0x154   : > { %1935 = vmatprep.mubr.msk.f32.mxu0 %vm2222_vm1, %v2223_v14 }
 0x226   : > { %v351_v32 = vpop.f32.mrb[0].mxu0 }
 0x227   : > { %v2380_v33 = vadd.f32 %v351_v32, %v281_v31  ;;  %v1932_v34 = vpop.f32.mrb[1].mxu0 }
 0x229   : > { %657 = vrot.lane.b32.xlu1 %v2380_v33, %s2224_s9  ;;  %v355_v35 = vmul.f32 0.35355338, %v2380_v33  ;;  %s2235_s9 = smov [#allocation2]  }
 0x22b   : > { %360 = vrot.lane.b32.xlu0 %v355_v35, %s2225_s10 }
 0x22d   : > { %357 = vrot.lane.b32.xlu1 %v355_v35, %s2226_s11 }
 0x22f   : > { %503 = vrot.lane.b32.xlu0 %v2380_v33, %s2226_s11 }
 0x231   : > { %363 = vrot.lane.b32.xlu1 %v355_v35, %s2227_s12 }
 0x29b   : > { %v658_v36 = vpop.permute.xlu1 %657 }
 0x29c   : > { %660 = vxpose.xlu1.b32.start.end [1/1] (short) (narrow) %v658_v36, 32 }
 0x29d   : > { %v361_v44 = vpop.permute.xlu0 %360 }
 0x29e   : > { %v366_v48 = vcombine.low %v355_v35, %v361_v44  ;;  %v367_v49 = vcombine.high %v355_v35, %v361_v44  ;;  %v692_v35 = vld [vmem:[%s2652_s1] sm:$0xff] }
 0x29f   : > { %v358_v37 = vpop.permute.xlu1 %357 }
 0x2a0   : > { %v374_v53 = vrot.slane %v366_v48, %v2388_v47  ;;  %v381_v54 = vrot.slane %v367_v49, %v2388_v47 }
 0x2a3   : > { %v364_v40 = vpop.permute.xlu1 %363 }
 0x2a4   : > { %v382_v45 = vcombine.low %v358_v37, %v364_v40  ;;  %v383_v46 = vcombine.high %v358_v37, %v364_v40 }
 0x2a6   : > { %v390_v51 = vrot.slane %v382_v45, %v2388_v47  ;;  %v397_v52 = vrot.slane %v383_v46, %v2388_v47 }
 0x2a8   : > { %v398_v56 = vcombine.low %v374_v53, %v390_v51  ;;  %v399_v57 = vcombine.high %v374_v53, %v390_v51  ;;  %v414_v58 = vcombine.low %v381_v54, %v397_v52  ;;  %v415_v59 = vcombine.high %v381_v54, %v397_v52  ;;  %v504_v53 = vpop.permute.xlu0 %503 }
 0x2aa   : > { %v406_v60 = vrot.slane %v398_v56, %v2395_v55  ;;  %v413_v61 = vrot.slane %v399_v57, %v2395_v55  ;;  %v422_v62 = vrot.slane %v414_v58, %v2395_v55  ;;  %v429_v63 = vrot.slane %v415_v59, %v2395_v55 }
 0x2ac   : > { %v434_v1 = vcombine.low %v406_v60, %v413_v61  ;;  %v1854_v2 = vcombine.high %v406_v60, %v413_v61  ;;  %v450_v3 = vcombine.low %v422_v62, %v429_v63  ;;  %v1855_v4 = vcombine.high %v422_v62, %v429_v63 }
 0x2ae   : > { %v441_v5 = vrot.slane %v434_v1, %v2388_v47  ;;  %v449_v6 = vrot.slane %v1854_v2, %v2388_v47  ;;  %v457_v12 = vrot.slane %v450_v3, %v2388_v47  ;;  %v465_v15 = vrot.slane %v1855_v4, %v2388_v47 }
 0x2b0   : > { %v466_v16 = vcombine.low %v441_v5, %v449_v6  ;;  %v482_v17 = vcombine.low %v457_v12, %v465_v15  ;;  %v467_v24 = vcombine.high %v441_v5, %v449_v6  ;;  %v483_v25 = vcombine.high %v457_v12, %v465_v15 }
 0x2b2   : > { %v474_v18 = vrot.slane %v466_v16, %v2395_v55  ;;  %v490_v19 = vrot.slane %v482_v17, %v2395_v55  ;;  %v481_v28 = vrot.slane %v467_v24, %v2395_v55  ;;  %v497_v29 = vrot.slane %v483_v25, %v2395_v55 }
 0x2b4   : > { %v498_v23 = vcombine.low %v474_v18, %v490_v19  ;;  %v499_v27 = vcombine.high %v474_v18, %v490_v19  ;;  %v500_v31 = vcombine.low %v481_v28, %v497_v29  ;;  %v501_v32 = vcombine.high %v481_v28, %v497_v29 }
 0x31c   : > { %v676_v21 = vpop.trf.xlu1 }
 0x31d   : > { %1934 = vmatpush3.msra.mxu0 %v676_v21 }
 0x31e   : > { %1936 = vmatmul.mubr.msk.f32.vlgmr.msra.gmra.mrb[2].mxu0 %vm693_vm2, %v498_v23  ;;  %1938 = vmatprep.subr.mxu0 %v2223_v14 }
 0x31f   : > { %1940 = vmatprep.mubr.msk.f32.mxu0 %vm2222_vm1, %v2223_v14 }
 0x320   : > { %v677_v26 = vpop.trf.xlu1 }
 0x321   : > { %1939 = vmatpush3.msra.mxu0 %v677_v26 }
 0x322   : > { %1941 = vmatmul.mubr.msk.f32.vlgmr.msra.gmra.mrb[4].mxu0 %vm693_vm2, %v499_v27  ;;  %1948 = vmatprep.subr.mxu0 %v2223_v14 }
 0x323   : > { %1950 = vmatprep.mubr.msk.f32.mxu0 %vm2222_vm1, %v2223_v14 }
 0x324   : > { %v678_v30 = vpop.trf.xlu1 }
 0x325   : > { %1944 = vmatpush3.msra.mxu1 %v678_v30 }
 0x326   : > { %1946 = vmatmul.mubr.msk.f32.vlgmr.msra.gmra.mrb[0].mxu1 %vm693_vm2, %v500_v31  ;;  %1953 = vmatprep.subr.mxu1 %v2223_v14 }
 0x327   : > { %1955 = vmatprep.mubr.msk.f32.mxu1 %vm2222_vm1, %v2223_v14 }
 0x328   : > { %v679_v34 = vpop.trf.xlu1 }
 0x329   : > { %1949 = vmatpush3.msra.mxu0 %v679_v34 }
 0x32a   : > { %1951 = vmatmul.mubr.msk.f32.vlgmr.msra.gmra.mrb[6].mxu0 %vm693_vm2, %v501_v32  ;;  %1958 = vmatprep.subr.mxu0 %v2223_v14 }
 0x32b   : > { %1960 = vmatprep.mubr.msk.f32.mxu0 %vm2222_vm1, %v2223_v14 }
 0x3f1   : > { %v763_v36 = vpop.f32.mrb[2].mxu0 }
 0x3f2   : > { %v764_v37 = vadd.f32 %v763_v36, %v692_v35  ;;  %v1937_v38 = vpop.f32.mrb[3].mxu0 }
 0x3f4   : > { %v986_v39 = vsel %vm693_vm2, %v764_v37, -inf }
 0x3f5   : > { %987 = vmax.xlane.f32.xlu0 %v986_v39  ;;  %v836_v40 = vpop.f32.mrb[4].mxu0 }
 0x3f6   : > { %v837_v41 = vadd.f32 %v836_v40, %v692_v35  ;;  %v1942_v42 = vpop.f32.mrb[5].mxu0 }
 0x3f8   : > { %v989_v43 = vsel %vm693_vm2, %v837_v41, -inf }
 0x3f9   : > { %v909_v44 = vpop.f32.mrb[0].mxu1  ;;  %990 = vmax.xlane.f32.xlu1 %v989_v43 }
 0x3fa   : > { %v910_v45 = vadd.f32 %v909_v44, %v692_v35  ;;  %v1947_v46 = vpop.f32.mrb[1].mxu1 }
 0x3fc   : > { %v992_v48 = vsel %vm693_vm2, %v910_v45, -inf }
 0x3fd   : > { %993 = vmax.xlane.f32.xlu0 %v992_v48  ;;  %v982_v49 = vpop.f32.mrb[6].mxu0 }
 0x3fe   : > { %v983_v50 = vadd.f32 %v982_v49, %v692_v35  ;;  %v1952_v51 = vpop.f32.mrb[7].mxu0 }
 0x400   : > { %v995_v52 = vsel %vm693_vm2, %v983_v50, -inf }
 0x401   : > { %996 = vmax.xlane.f32.xlu0 %v995_v52 }
 0x40a   : > { %509 = vrot.lane.b32.xlu1 %v2380_v33, %s2230_s15 }
 0x417   : > { %505 = vrot.lane.b32.xlu0 %v2380_v33, %s2225_s10  ;;  %s2161_s10 = sshll.u32 %s2235_s9, 4  ;;  %s2162_s10 = int_to_ptr.vmem [resolvable:$false] %s2161_s10 }
 0x418   : > { %s2163_s11 = scalar_lea.vmem %s2162_s10, 256 }
 0x41b   : > { %507 = vrot.lane.b32.xlu0 %v2380_v33, %s2227_s12 }
 0x482   : > { %v988_v54 = vpop.xlane.xlu0 %987 }
 0x483   : > { %v998_v56 = vsub.f32 %v764_v37, %v988_v54 }
 0x485   : > { %v1002_v57 = vmul.f32 1.442695, %v998_v56 }
 0x486   : > { %v991_v63 = vpop.xlane.xlu1 %990 }
 0x487   : > { %2137 = vpow2.f32 %v1002_v57  ;;  %v999_v1 = vsub.f32 %v837_v41, %v991_v63 }
 0x489   : > { %v1004_v2 = vmul.f32 1.442695, %v999_v1 }
 0x48a   : > { %v994_v58 = vpop.xlane.xlu0 %993  ;;  %v510_v21 = vpop.permute.xlu1 %509 }
 0x48b   : > { %v1000_v33 = vsub.f32 %v910_v45, %v994_v58  ;;  %2139 = vpow2.f32 %v1004_v2 }
 0x48d   : > { %v1006_v3 = vmul.f32 1.442695, %v1000_v33 }
 0x48e   : > { %v997_v59 = vpop.xlane.xlu0 %996 }
 0x48f   : > { %v1001_v4 = vsub.f32 %v983_v50, %v997_v59  ;;  %2141 = vpow2.f32 %v1006_v3 }
 0x491   : > { %v2438_v60 = vpop.eup %2137  ;;  %v1008_v5 = vmul.f32 1.442695, %v1001_v4 }
 0x492   : > { %v506_v61 = vpop.permute.xlu0 %505  ;;  %v1010_v62 = vsel %vm693_vm2, %v2438_v60, 0.0 }
 0x493   : > { %1011 = vadd.xlane.f32.xlu0 %v1010_v62  ;;  %513 = vrot.lane.b32.xlu1 %v506_v61, %s2230_s15  ;;  %2143 = vpow2.f32 %v1008_v5 }
 0x495   : > { %v2140_v6 = vpop.eup %2139 }
 0x496   : > { %v1013_v12 = vsel %vm693_vm2, %v2140_v6, 0.0  ;;  %v508_v19 = vpop.permute.xlu0 %507 }
 0x499   : > { %v2445_v15 = vpop.eup %2141 }
 0x49a   : > { %v1016_v16 = vsel %vm693_vm2, %v2445_v15, 0.0 }
 0x49d   : > { %v2449_v17 = vpop.eup %2143 }
 0x49e   : > { %v1019_v18 = vsel %vm693_vm2, %v2449_v17, 0.0 }
 0x4a9   : > { %511 = vrot.lane.b32.xlu0 %v504_v53, %s2230_s15 }
 0x4b7   : > { %1014 = vadd.xlane.f32.xlu1 %v1013_v12 }
 0x4bb   : > { %1017 = vadd.xlane.f32.xlu1 %v1016_v16 }
 0x4bf   : > { %1020 = vadd.xlane.f32.xlu1 %v1019_v18 }
 0x4d0   : > { %515 = vrot.lane.b32.xlu1 %v508_v19, %s2230_s15  ;;  %s240_s15 = sand.u32 1, %s2211_s22  }
 0x4d1   : > { %s1775_s29 = scalar_lea.sflag [#allocation3], %s240_s15 }
 0x4d4   : > { %2126 = vrot.lane.b32.xlu1 %v2125_v11, %s2231_s16 }
 0x505   : > { %v514_v23 = vpop.permute.xlu1 %513 }
 0x506   : > { %v521_v28 = vcombine.low %v510_v21, %v514_v23  ;;  %v522_v29 = vcombine.high %v510_v21, %v514_v23 }
 0x508   : > { %v529_v35 = vrot.slane %v521_v28, %v2388_v47  ;;  %v536_v36 = vrot.slane %v522_v29, %v2388_v47 }
 0x520   : > { %v1012_v26 = vpop.xlane.xlu0 %1011 }
 0x521   : > { %2145 = vrcp.f32 %v1012_v26 }
 0x524   : > { %v512_v30 = vpop.permute.xlu0 %511 }
 0x52b   : > { %v2146_v57 = vpop.eup %2145 }
 0x52c   : > { %v1026_v18 = vmul.f32 %v2146_v57, %v2438_v60  ;;  %v2130_v60 = vpack.i.bf16 %v2353_v13, %v2343_v9 }
 0x52e   : > { %2131 = vrot.lane.b32.xlu1 %v2130_v60, %s2231_s16  ;;  %s1851_s16 = sshll.u32 %s240_s15, 3 }
 0x544   : > { %v1015_v24 = vpop.xlane.xlu1 %1014 }
 0x545   : > { %2147 = vrcp.f32 %v1015_v24 }
 0x548   : > { %v1018_v25 = vpop.xlane.xlu1 %1017 }
 0x549   : > { %2149 = vrcp.f32 %v1018_v25 }
 0x54c   : > { %v1021_v27 = vpop.xlane.xlu1 %1020 }
 0x54d   : > { %2151 = vrcp.f32 %v1021_v27 }
 0x54f   : > { %v2148_v63 = vpop.eup %2147 }
 0x550   : > { %v516_v31 = vpop.permute.xlu1 %515  ;;  %v1027_v19 = vmul.f32 %v2148_v63, %v2140_v6 }
 0x551   : > { %v537_v32 = vcombine.low %v512_v30, %v516_v31  ;;  %v538_v34 = vcombine.high %v512_v30, %v516_v31 }
 0x553   : > { %v545_v37 = vrot.slane %v537_v32, %v2388_v47  ;;  %v552_v38 = vrot.slane %v538_v34, %v2388_v47  ;;  %v2150_v33 = vpop.eup %2149 }
 0x554   : > { %v1028_v24 = vmul.f32 %v2150_v33, %v2445_v15  ;;  %v2127_v27 = vpop.permute.xlu1 %2126 }
 0x555   : > { %v553_v39 = vcombine.low %v529_v35, %v545_v37  ;;  %v554_v40 = vcombine.high %v529_v35, %v545_v37  ;;  %v569_v41 = vcombine.low %v536_v36, %v552_v38  ;;  %v570_v42 = vcombine.high %v536_v36, %v552_v38 }
 0x556   : > { %v2129_v28 = vunpack.i.h.bf16 %v2127_v27  ;;  %v2128_v29 = vunpack.i.l.bf16 %v2127_v27 }
 0x557   : > { %v561_v43 = vrot.slane %v553_v39, %v2395_v55  ;;  %v568_v44 = vrot.slane %v554_v40, %v2395_v55  ;;  %v577_v45 = vrot.slane %v569_v41, %v2395_v55  ;;  %v584_v46 = vrot.slane %v570_v42, %v2395_v55  ;;  %v2152_v16 = vpop.eup %2151 }
 0x558   : > { %v1029_v25 = vmul.f32 %v2152_v16, %v2449_v17  ;;  %v2037_v8 = vpack.c.bf16 %v2129_v28, %v2128_v29 }
 0x559   : > { %v589_v48 = vcombine.low %v561_v43, %v568_v44  ;;  %v1856_v49 = vcombine.high %v561_v43, %v568_v44  ;;  %v605_v50 = vcombine.low %v577_v45, %v584_v46  ;;  %v1857_v51 = vcombine.high %v577_v45, %v584_v46 }
 0x55b   : > { %v596_v52 = vrot.slane %v589_v48, %v2388_v47  ;;  %v604_v53 = vrot.slane %v1856_v49, %v2388_v47  ;;  %v612_v54 = vrot.slane %v605_v50, %v2388_v47  ;;  %v620_v56 = vrot.slane %v1857_v51, %v2388_v47 }
 0x55d   : > { %v621_v58 = vcombine.low %v596_v52, %v604_v53  ;;  %v637_v59 = vcombine.low %v612_v54, %v620_v56  ;;  %v622_v61 = vcombine.high %v596_v52, %v604_v53  ;;  %v638_v62 = vcombine.high %v612_v54, %v620_v56 }
 0x55f   : > { %v629_v1 = vrot.slane %v621_v58, %v2395_v55  ;;  %v645_v2 = vrot.slane %v637_v59, %v2395_v55  ;;  %v636_v3 = vrot.slane %v622_v61, %v2395_v55  ;;  %v652_v4 = vrot.slane %v638_v62, %v2395_v55 }
 0x561   : > { %v653_v5 = vcombine.low %v629_v1, %v645_v2  ;;  %v654_v12 = vcombine.high %v629_v1, %v645_v2  ;;  %v655_v21 = vcombine.low %v636_v3, %v652_v4  ;;  %v656_v23 = vcombine.high %v636_v3, %v652_v4 }
 0x563   : > { %1954 = vmatpush3.msra.mxu1 %v653_v5  ;;  %1959 = vmatpush3.msra.mxu0 %v654_v12 }
 0x564   : > { %1956 = vmatmul.mubr.msk.f32.vlgmr.msra.gmra.mrb[2].mxu1 %vm693_vm2, %v1026_v18  ;;  %1961 = vmatmul.mubr.msk.f32.vlgmr.msra.gmra.mrb[8].mxu0 %vm693_vm2, %v1027_v19 }
 0x565   : > { %1963 = vmatprep.subr.mxu1 %v2223_v14  ;;  %1968 = vmatprep.subr.mxu0 %v2223_v14 }
 0x566   : > { %1964 = vmatpush3.msra.mxu1 %v655_v21  ;;  %1969 = vmatpush3.msra.mxu0 %v656_v23 }
 0x567   : > { %1965 = vmatprep.mubr.msk.f32.mxu1 %vm2222_vm1, %v2223_v14  ;;  %1970 = vmatprep.mubr.msk.f32.mxu0 %vm2222_vm1, %v2223_v14 }
 0x568   : > { %1966 = vmatmul.mubr.msk.f32.vlgmr.msra.gmra.mrb[4].mxu1 %vm693_vm2, %v1028_v24  ;;  %1971 = vmatmul.mubr.msk.f32.vlgmr.msra.gmra.mrb[10].mxu0 %vm693_vm2, %v1029_v25 }
 0x569   : > { %2036 = vmatprep.subr.bf16.mxu0 %v2221_v10  ;;  %1981 = vmatprep.mubr.msk.f32.mxu0 %vm2222_vm1, %v2223_v14 }
 0x56a   : > { %2048 = vmatprep.subr.bf16.mxu1 %v2221_v10  ;;  %2027 = vmatprep.mubr.msk.f32.mxu1 %vm2222_vm1, %v2223_v14 }
 0x56b   : > { %2038 = vmatpush3.bf16.msra.mxu0 %v2037_v8  ;;  %v1682_v8 = vld [vmem:[%s2656_s5] sm:$0xff] }
 0x56c   : > { %2039 = vmatprep.subr.bf16.mxu0 %v2221_v10 }
 0x5a0   : > { %v2132_v11 = vpop.permute.xlu1 %2131 }
 0x5a1   : > { %v2134_v40 = vunpack.i.h.bf16 %v2132_v11  ;;  %v2133_v41 = vunpack.i.l.bf16 %v2132_v11  ;;  %v1683_v11 = vld [vmem:[%s2656_s5 + $0x8] sm:$0xff] }
 0x5a3   : > { %v2040_v46 = vpack.c.bf16 %v2134_v40, %v2133_v41  ;;  %v1584_v40 = vsub.s32 2, %v2364_v20  ;;  %v1589_v41 = vsub.s32 3, %v2364_v20 }
 0x5a5   : > { %2041 = vmatpush3.bf16.msra.mxu0 %v2040_v46 }
 0x5a6   : > { %2042 = vmatprep.subr.bf16.mxu0 %v2221_v10 }
 0x637   : > { %v1099_v6 = vpop.f32.mrb[2].mxu1  ;;  %v1172_v15 = vpop.f32.mrb[8].mxu0 }
 0x638   : > { %v1957_v17 = vpop.f32.mrb[3].mxu1  ;;  %v1962_v26 = vpop.f32.mrb[9].mxu0 }
 0x63b   : > { %v1245_v30 = vpop.f32.mrb[4].mxu1  ;;  %v1318_v31 = vpop.f32.mrb[10].mxu0 }
 0x63c   : > { %v1322_v32 = vcombine.low %v1099_v6, %v1245_v30  ;;  %v1323_v34 = vcombine.high %v1099_v6, %v1245_v30  ;;  %v1338_v35 = vcombine.low %v1172_v15, %v1318_v31  ;;  %v1339_v36 = vcombine.high %v1172_v15, %v1318_v31  ;;  %v1967_v37 = vpop.f32.mrb[5].mxu1  ;;  %v1972_v7 = vpop.f32.mrb[11].mxu0 }
 0x63d   : > { %v1595_v37 = vld [vmem:[%s2655_s4 + $0x18] sm:$0xff] }
 0x63e   : > { %v1330_v9 = vrot.slane %v1322_v32, %v2388_v47  ;;  %v1337_v13 = vrot.slane %v1323_v34, %v2388_v47  ;;  %v1346_v38 = vrot.slane %v1338_v35, %v2388_v47  ;;  %v1353_v39 = vrot.slane %v1339_v36, %v2388_v47  ;;  %v1592_v34 = vld [vmem:[%s2655_s4] sm:$0xff]  ;;  %v1594_v36 = vld [vmem:[%s2655_s4 + $0x10] sm:$0xff] }
 0x63f   : > { %v2046_v7 = vpack.c.bf16 %v1595_v37, %v1594_v36 }
 0x640   : > { %v1354_v42 = vcombine.low %v1330_v9, %v1346_v38  ;;  %v1355_v43 = vcombine.high %v1330_v9, %v1346_v38  ;;  %v1370_v44 = vcombine.low %v1337_v13, %v1353_v39  ;;  %v1371_v45 = vcombine.high %v1337_v13, %v1353_v39 }
 0x641   : > { %v2049_v9 = vpack.c.bf16 %v1683_v11, %v1682_v8 }
 0x642   : > { %v1362_v48 = vrot.slane %v1354_v42, %v2395_v55  ;;  %v1369_v49 = vrot.slane %v1355_v43, %v2395_v55  ;;  %v1378_v50 = vrot.slane %v1370_v44, %v2395_v55  ;;  %v1385_v51 = vrot.slane %v1371_v45, %v2395_v55 }
 0x643   : > { %2050 = vmatpush3.bf16.msra.mxu1 %v2049_v9  ;;  %v1585_v42 = vrot.slane %v2370_v22, %v1584_v40  ;;  %v1590_v45 = vrot.slane %v2370_v22, %v1589_v41 }
 0x644   : > { %v1390_v52 = vcombine.low %v1362_v48, %v1369_v49  ;;  %v1866_v53 = vcombine.high %v1362_v48, %v1369_v49  ;;  %v1406_v54 = vcombine.low %v1378_v50, %v1385_v51  ;;  %v1867_v56 = vcombine.high %v1378_v50, %v1385_v51  ;;  %2051 = vmatprep.subr.bf16.mxu1 %v2221_v10  ;;  %v1684_v49 = vld [vmem:[%s2656_s5 + $0x10] sm:$0xff]  ;;  %v1685_v50 = vld [vmem:[%s2656_s5 + $0x18] sm:$0xff] }
 0x645   : > { %v2052_v51 = vpack.c.bf16 %v1685_v50, %v1684_v49 }
 0x646   : > { %v1397_v57 = vrot.slane %v1390_v52, %v2388_v47  ;;  %v1405_v58 = vrot.slane %v1866_v53, %v2388_v47  ;;  %v1413_v59 = vrot.slane %v1406_v54, %v2388_v47  ;;  %v1421_v61 = vrot.slane %v1867_v56, %v2388_v47  ;;  %v1686_v52 = vld [vmem:[%s2656_s5 + $0x20] sm:$0xff]  ;;  %v1687_v53 = vld [vmem:[%s2656_s5 + $0x28] sm:$0xff]  ;;  %v1688_v56 = vld [vmem:[%s2656_s5 + $0x30] sm:$0xff] }
 0x647   : > { %2053 = vmatpush3.bf16.msra.mxu1 %v2052_v51  ;;  %v2055_v54 = vpack.c.bf16 %v1687_v53, %v1686_v52 }
 0x648   : > { %v1423_v62 = vcombine.high %v1397_v57, %v1405_v58  ;;  %v1439_v63 = vcombine.high %v1413_v59, %v1421_v61  ;;  %v1422_v1 = vcombine.low %v1397_v57, %v1405_v58  ;;  %v1438_v2 = vcombine.low %v1413_v59, %v1421_v61  ;;  %2054 = vmatprep.subr.bf16.mxu1 %v2221_v10  ;;  %v1689_v57 = vld [vmem:[%s2656_s5 + $0x38] sm:$0xff]  ;;  %v1690_v59 = vld [vmem:[%s2656_s5 + $0x40] sm:$0xff]  ;;  %v1691_v61 = vld [vmem:[%s2656_s5 + $0x48] sm:$0xff] }
 0x649   : > { %v2058_v58 = vpack.c.bf16 %v1689_v57, %v1688_v56 }
 0x64a   : > { %v1437_v33 = vrot.slane %v1423_v62, %v2395_v55  ;;  %v1453_v3 = vrot.slane %v1439_v63, %v2395_v55  ;;  %v1430_v4 = vrot.slane %v1422_v1, %v2395_v55  ;;  %v1446_v5 = vrot.slane %v1438_v2, %v2395_v55  ;;  %v1692_v63 = vld [vmem:[%s2656_s5 + $0x50] sm:$0xff]  ;;  %v1693_v1 = vld [vmem:[%s2656_s5 + $0x58] sm:$0xff] }
 0x64b   : > { %v1477_v55 = vsub.s32 4, %v2364_v20  ;;  %2056 = vmatpush3.bf16.msra.mxu1 %v2055_v54  ;;  %v2061_v62 = vpack.c.bf16 %v1691_v61, %v1690_v59  ;;  %v2064_v2 = vpack.c.bf16 %v1693_v1, %v1692_v63 }
 0x64c   : > { %v1456_v12 = vcombine.low %v1437_v33, %v1453_v3  ;;  %v1455_v16 = vcombine.high %v1430_v4, %v1446_v5  ;;  %v1457_v18 = vcombine.high %v1437_v33, %v1453_v3  ;;  %v1454_v19 = vcombine.low %v1430_v4, %v1446_v5  ;;  %2057 = vmatprep.subr.bf16.mxu1 %v2221_v10  ;;  %v1694_v33 = vld [vmem:[%s2656_s5 + $0x60] sm:$0xff]  ;;  %v1695_v3 = vld [vmem:[%s2656_s5 + $0x68] sm:$0xff]  ;;  %v1696_v5 = vld [vmem:[%s2656_s5 + $0x70] sm:$0xff] }
 0x64d   : > { %v1478_v6 = vrot.slane %v2370_v22, %v1477_v55  ;;  %v2067_v4 = vpack.c.bf16 %v1695_v3, %v1694_v33 }
 0x64e   : > { %1463 = vrot.lane.b32.xlu0 %v1456_v12, %s2232_s17  ;;  %1459 = vrot.lane.b32.xlu1 %v1455_v16, %s2233_s18  ;;  %v1697_v12 = vld [vmem:[%s2656_s5 + $0x78] sm:$0xff]  ;;  %s1871_s17 = sshll.u32 %s2292_s25, 7  ;;  %s242_s18 = scalar_lea.vmem [#allocation2], %s1851_s16 }
 0x64f   : > { %2059 = vmatpush3.bf16.msra.mxu1 %v2058_v58  ;;  %v2070_v16 = vpack.c.bf16 %v1697_v12, %v1696_v5  ;;  %s2608_s28 = scalar_lea.hbm %s2657_s6, %s1871_s17 }
 0x650   : > { %2060 = vmatprep.subr.bf16.mxu1 %v2221_v10 }
 0x652   : > { %1467 = vrot.lane.b32.xlu1 %v1457_v18, %s2234_s19  ;;  %v1598_v18 = vsub.s32 6, %v2364_v20  ;;  %s1788_s19 = sshll.u32 %s242_s18, 4  ;;  %s2610_s19 = int_to_ptr.vmem [resolvable:$true] %s1788_s19 }
 0x653   : > { %2062 = vmatpush3.bf16.msra.mxu1 %v2061_v62  ;;  %s2157_s25 = scalar_lea.vmem %s2610_s19, 128  ;;  %p2164_p0 = scmp.lt.s32.totalorder %s2610_s19, %s2162_s10 }
 0x654   : > { %2063 = vmatprep.subr.bf16.mxu1 %v2221_v10  ;;  %p2158_p11 = scmp.ne.s32.totalorder %s2610_s19, %s2157_s25  ;;  %p2165_p1 = scmp.lt.s32.totalorder %s2163_s11, %s2157_s25 }
 0x656   : > { %p2159_p12 = pnand %p2158_p11, %p2309_p5  ;;  %p2166_p2 = por %p2165_p1, %p2164_p0 }
 0x657   : > { %2065 = vmatpush3.bf16.msra.mxu1 %v2064_v2 }
 0x658   : > { %2066 = vmatprep.subr.bf16.mxu1 %v2221_v10  ;;  %p2160_p13 = pneg %p2159_p12 }
 0x65a   : > { %p2167_p3 = pnand %p2166_p2, %p2160_p13 }
 0x65b   : > { %2068 = vmatpush3.bf16.msra.mxu1 %v2067_v4 }
 0x65c   : > { %2069 = vmatprep.subr.bf16.mxu1 %v2221_v10 }
 0x65f   : > { %2071 = vmatpush3.bf16.msra.mxu1 %v2070_v16 }
 0x6c0   : > { %v1460_v47 = vpop.permute.xlu1 %1459  ;;  %v1464_v21 = vpop.permute.xlu0 %1463 }
 0x6c1   : > { %v1470_v23 = vsel %vm693_vm2, %v1454_v19, %v1460_v47  ;;  %v1599_v19 = vrot.slane %v2370_v22, %v1598_v18 }
 0x6c2   : > { %v1472_v25 = vsel %vm1471_vm3, %v1470_v23, %v1464_v21 }
 0x6c4   : > { %v1468_v24 = vpop.permute.xlu1 %1467 }
 0x6c5   : > { %v1474_v60 = vsel %vm1473_vm4, %v1472_v25, %v1468_v24 }
 0x6c6   : > { %1982 = vmatmul.mubr.msk.f32.vlgmr.msra.gmra.mrb[12].mxu0 %vm253_vm0, %v1474_v60 }
 0x6c7   : > { %1992 = vmatprep.mubr.msk.f32.mxu0 %vm2222_vm1, %v2223_v14 }
 0x799   : > { %v1564_v15 = vpop.f32.mrb[12].mxu0 }
 0x79a   : > { %v1565_v17 = vadd.f32 %v1564_v15, %v1478_v6  ;;  %v1983_v26 = vpop.f32.mrb[13].mxu0 }
 0x79c   : > { %v2519_v27 = vadd.f32 %v1565_v17, %v2324_v0  ;;  %v1593_v0 = vld [vmem:[%s2655_s4 + $0x8] sm:$0xff] }
 0x79d   : > { %v2043_v35 = vpack.c.bf16 %v1593_v0, %v1592_v34 }
 0x79e   : > { %v1569_v28 = vsel %vm253_vm0, %v2519_v27, 0.0 }
 0x79f   : > { %1570 = vadd.xlane.f32.xlu0 %v1569_v28  ;;  %2044 = vmatpush3.bf16.msra.mxu0 %v2043_v35  ;;  %v1700_v28 = vsub.s32 5, %v2364_v20 }
 0x7a0   : > { %2045 = vmatprep.subr.bf16.mxu0 %v2221_v10 }
 0x7a3   : > { %2047 = vmatpush3.bf16.msra.mxu0 %v2046_v7 }
 0x82c   : > { %v1571_v29 = vpop.xlane.xlu0 %1570 }
 0x82d   : > { %v1572_v30 = vmul.f32 0.03125, %v1571_v29  ;;  %v1701_v29 = vrot.slane %v2370_v22, %v1700_v28 }
 0x82f   : > { %v1573_v31 = vsub.f32 %v2519_v27, %v1572_v30 }
 0x831   : > { %v1574_v32 = vmul.f32 %v1573_v31, %v1573_v31 }
 0x833   : > { %v1575_v14 = vsel %vm253_vm0, %v1574_v32, 0.0 }
 0x834   : > { %1576 = vadd.xlane.f32.xlu1 %v1575_v14 }
 0x8c1   : > { %v1577_v13 = vpop.xlane.xlu1 %1576 }
 0x8c2   : > { %v1578_v38 = vmul.f32 0.03125, %v1577_v13 }
 0x8c4   : > { %v1579_v39 = vadd.f32 1e-05, %v1578_v38 }
 0x8c6   : > { %2153 = vrsqrt.f32 %v1579_v39 }
 0x8d0   : > { %v2154_v43 = vpop.eup %2153 }
 0x8d1   : > { %v1581_v44 = vmul.f32 %v2154_v43, %v1573_v31 }
 0x8d3   : > { %v1586_v46 = vmul.f32 %v1585_v42, %v1581_v44 }
 0x8d5   : > { %v1591_v48 = vadd.f32 %v1590_v45, %v1586_v46 }
 0x8d7   : > { %1993 = vmatmul.mubr.msk.f32.vlgmr.msra.gmra.mrb[14].mxu0 %vm253_vm0, %v1591_v48 }
 0x9aa   : > { %v1669_v47 = vpop.f32.mrb[14].mxu0 }
 0x9ab   : > { %v1670_v21 = vadd.f32 %v1669_v47, %v1599_v19  ;;  %v1994_v23 = vpop.f32.mrb[15].mxu0 }
 0x9ad   : > { %v1674_v24 = vmul.f32 %v1670_v21, %v1670_v21  ;;  %v1673_v17 = vmul.f32 0.5, %v1670_v21 }
 0x9af   : > { %v1675_v25 = vmul.f32 %v1674_v24, %v1670_v21 }
 0x9b1   : > { %v1676_v60 = vmul.f32 0.044715, %v1675_v25 }
 0x9b3   : > { %v1677_v55 = vadd.f32 %v1676_v60, %v1670_v21 }
 0x9b5   : > { %v1678_v6 = vmul.f32 0.7978846, %v1677_v55 }
 0x9b7   : > { %2155 = vtanh.f32 %v1678_v6 }
 0x9c1   : > { %v2156_v15 = vpop.eup %2155 }
 0x9c2   : > { %v1680_v26 = vadd.f32 1.0, %v2156_v15 }
 0x9c4   : > { %v1681_v10 = vmul.f32 %v1680_v26, %v1673_v17 }
 0x9c6   : > { %2028 = vmatmul.mubr.f32.vlgmr.msra.gmra.mrb[6].mxu1 %v1681_v10 }
 0xa99   : > { %v1768_v30 = vpop.f32.mrb[6].mxu1 }
 0xa9a   : > { %v1769_v31 = vadd.f32 %v1768_v30, %v1701_v29  ;;  %v2029_v32 = vpop.f32.mrb[7].mxu1 }
 0xa9c   : > { %v1772_v14 = vadd.f32 %v1769_v31, %v2519_v27 }
 0xa9e   : > { %1773 = vst.msk [vmem:[%s242_s18] sm:$0xff] %vm253_vm0, %v1772_v14 }
 0xa9f   : > { %2170 = shalt.err (!%p2167_p3)
}
 0xaa0   : > { %s2171_s12 = scalar_lea.hbm %s2608_s28, 128  ;;  %s2175_s15 = scalar_lea.hbm %s2657_s6, 256 }
 0xaa1   : > { %p2172_p4 = scmp.ne.s32.totalorder %s2608_s28, %s2171_s12  ;;  %p2176_p9 = scmp.lt.u32.totalorder %s2608_s28, %s2657_s6 }
 0xaa2   : > { %p2177_p10 = scmp.lt.u32.totalorder %s2175_s15, %s2171_s12  ;;  %p2179_p12 = scmp.lt.u32.totalorder %s2171_s12, %s2608_s28 }
 0xaa3   : > { %p2173_p7 = pnand %p2172_p4, %p2309_p5 }
 0xaa4   : > { %p2178_p11 = por %p2177_p10, %p2176_p9 }
 0xaa5   : > { %p2174_p8 = pneg %p2173_p7 }
 0xaa6   : > { %p2180_p13 = por %p2179_p12, %p2178_p11 }
 0xaa8   : > { %p2181_p0 = pnand %p2180_p13, %p2174_p8 }
 0xaaa   : > { %2184 = shalt.err (!%p2181_p0)
}
 0xaab   : > { %2072 = dma.vmem_to_hbm [thread:$0]  (%p2309_p5), %s2610_s19, 128, %s2608_s28, %s1775_s29  }
 0xaac PF: > { %p2078_p1 = scmp.ge.s32.totalorder %s2219_s24, 2  ;;  %s1800_s18 = sand.u32 1, %s2207_s21  }
 0xaad   : > { %s1801_s20 = scalar_lea.sflag [#allocation3], %s1800_s18 }
 0xaae   : > { %p2075_p2 = pnand %p2078_p1, %p2313_p6 }
 0xab0   : > { %2202 = dma.done.wait (!%p2075_p2), %s1801_s20, 128  }
 0xab1   : > { %2204 = vsyncadd (!%p2075_p2), %s1801_s20, 4294967168  ;;  %p16_p3 = scmp.ge.s32.totalorder %s2296_s27, 4   ;;  %s2660_s21 = smov %s2211_s22 }
 0xab2   : > { %s2661_s22 = smov %s2215_s23  ;;  %s2662_s23 = smov %s2307_s30 }
 0xab3   : > { %s2663_s24 = smov %s2296_s27  ;;  %18 = sbr.rel (!%p16_p3) target bundleno = 3 (0x3), region = 79 }
 0xaba   :  { %1806 = vsyncpa [#allocation3], 1 }
 0xabb   :  { %1808 = vsyncpa [#allocation3 + $0x1], 1 }

</bundles_post_ra>
